<compile_context>
chip_gen: v5e
topology: v5e:2x2
jax: 0.10.0
libtpu: 0.0.40
codegen_flags: <defaults>
</compile_context>

<pallas_src>
import functools

import jax
import jax.numpy as jnp
from jax.experimental import pallas as pl
from jax.experimental.pallas import tpu as pltpu

ALPHA = 0.01  # LeakyReLU negative slope (module default)


def _round_up(n, m):
    return ((n + m - 1) // m) * m


def _round_down(n, m):
    return (n // m) * m


def _leaky_relu(x, alpha):
    return jnp.where(x > 0, x, alpha * x)


def _mlp_kernel(x_ref, w1_ref, b1_ref, w2_ref, b2_ref, w3_ref, b3_ref,
                wo_ref, bo_ref, o_ref, *, alpha, sigmoid_out):
    # One batch tile per grid step; all weights/biases stay VMEM-resident across steps.
    # Cast the tile to the MXU dtype *here* (VPU op hidden under the tile DMA) instead
    # of paying a separate wrapper-side HBM cast pass; accumulate in f32.
    x = x_ref[...].astype(w1_ref.dtype)
    h = jnp.dot(x, w1_ref[...], preferred_element_type=jnp.float32) + b1_ref[...]
    h = _leaky_relu(h, alpha)
    h = jnp.dot(h.astype(w2_ref.dtype), w2_ref[...],
                preferred_element_type=jnp.float32) + b2_ref[...]
    h = _leaky_relu(h, alpha)
    h = jnp.dot(h.astype(w3_ref.dtype), w3_ref[...],
                preferred_element_type=jnp.float32) + b3_ref[...]
    h = _leaky_relu(h, alpha)
    out = jnp.dot(h.astype(wo_ref.dtype), wo_ref[...],
                  preferred_element_type=jnp.float32) + bo_ref[...]
    if sigmoid_out:
        out = jax.nn.sigmoid(out)
    o_ref[...] = out.astype(o_ref.dtype)


def init_params(key, input_size, hidden_units=64, num_hidden_layers=3):
    """Deterministic synthetic params. Weights stored (in, out); biases (1, out)."""
    d_in = input_size[0] * input_size[1]
    assert num_hidden_layers == 3, "kernel is written for the module default of 3 hidden layers"
    dims = [d_in] + [hidden_units] * num_hidden_layers + [1]
    names = ["1", "2", "3", "o"]
    params = {}
    for idx, (fan_in, fan_out) in enumerate(zip(dims[:-1], dims[1:])):
        key, kw, kb = jax.random.split(key, 3)
        bound = 1.0 / jnp.sqrt(jnp.float32(fan_in))
        params[f"w{names[idx]}"] = jax.random.uniform(
            kw, (fan_in, fan_out), jnp.float32, -bound, bound)
        params[f"b{names[idx]}"] = jax.random.uniform(
            kb, (1, fan_out), jnp.float32, -bound, bound)
    return params


def audio_discriminator_forward(x, params, *, alpha=ALPHA, sigmoid_out=False,
                                block_batch=8192, mxu_dtype=jnp.bfloat16):
    """x: (B, F, T) -> (B, 1) float32."""
    B = x.shape[0]
    D = x.shape[1] * x.shape[2]
    H = params["w1"].shape[1]

    # Free, layout-preserving reshape (nn.Flatten); keep the producer dtype.
    x2 = x.reshape(B, -1)

    # Tiny-batch only: pad up to one f32 sublane group so the matmul M dim and the
    # block's sublane dim form a full group. <=7 extra rows; never triggers for real B.
    B_work = B
    if B < 8:
        B_work = 8
        x2 = jnp.pad(x2, ((0, B_work - B), (0, 0)))
    in_itemsize = jnp.dtype(x2.dtype).itemsize

    # Weights in MXU dtype (tiny, VMEM-resident across the whole grid); biases stay f32.
    wp = {k: (v.astype(mxu_dtype) if k.startswith("w") else v.astype(jnp.float32))
          for k, v in params.items()}
    weight_bytes = sum(int(v.size) * jnp.dtype(v.dtype).itemsize for v in wp.values())

    sub = 16  # batch-tile granularity: multiple of 8 (f32 sublanes) and 16 (bf16 packing)

    # Balanced tiles: ~equal-size tiles of at most block_batch rows.
    tb = _round_up(pl.cdiv(B_work, max(1, pl.cdiv(B_work, block_batch))), sub)

    # v7x megacore: keep >=2 (prefer >=4) grid steps so the "parallel" batch axis has
    # work for both TensorCores.
    if B_work >= 4 * sub:
        tb = min(tb, _round_up(pl.cdiv(B_work, 4), sub))
    elif B_work >= 2 * sub:
        tb = min(tb, _round_up(pl.cdiv(B_work, 2), sub))

    # VMEM budget per tile (target well under v7x's 64 MiB/TC): 2 double-buffered x
    # tiles + (tb, H) f32 activations (+ their bf16 copies) + double-buffered output.
    per_row_bytes = 2 * D * in_itemsize + H * (3 * 4 + 2 * 2) + 2 * 4
    budget_rows = (40 * 1024 * 1024) // per_row_bytes
    tb = min(tb, max(sub, _round_down(budget_rows, sub)))

    if tb >= B_work:
        tb = B_work  # single full-batch block (full-array block dims are always legal)
    grid = (pl.cdiv(B_work, tb),)

    x_spec = pl.BlockSpec((tb, D), lambda i: (i, 0))
    out_spec = pl.BlockSpec((tb, 1), lambda i: (i, 0))

    def const_spec(arr):
        # Full-array block, constant block index -> stays resident across grid steps.
        return pl.BlockSpec(arr.shape, lambda i: (0, 0))

    # Explicit VMEM limit covering the x double-buffer, f32 activation temporaries,
    # weights (counted twice to allow for the pipeline's second buffer) and the output.
    x_tile_bytes = tb * D * in_itemsize
    act_bytes = tb * H * (3 * 4 + 2 * 2)
    vmem_limit = 2 * x_tile_bytes + act_bytes + 2 * weight_bytes + 2 * tb * 4 + (2 << 20)
    vmem_limit = int(min(max(vmem_limit, 8 << 20), 56 << 20))

    kernel = functools.partial(_mlp_kernel, alpha=alpha, sigmoid_out=sigmoid_out)

    out = pl.pallas_call(
        kernel,
        out_shape=jax.ShapeDtypeStruct((B_work, 1), jnp.float32),
        grid=grid,
        in_specs=[x_spec,
                  const_spec(wp["w1"]), const_spec(wp["b1"]),
                  const_spec(wp["w2"]), const_spec(wp["b2"]),
                  const_spec(wp["w3"]), const_spec(wp["b3"]),
                  const_spec(wp["wo"]), const_spec(wp["bo"])],
        out_specs=out_spec,
        compiler_params=pltpu.CompilerParams(
            dimension_semantics=("parallel",),
            vmem_limit_bytes=vmem_limit),
    )(x2,
      wp["w1"], wp["b1"],
      wp["w2"], wp["b2"],
      wp["w3"], wp["b3"],
      wp["wo"], wp["bo"])

    return out[:B] if B_work != B else out


def _reference_forward_f32(x, params, *, alpha=ALPHA, sigmoid_out=False):
    B = x.shape[0]
    h = x.reshape(B, -1).astype(jnp.float32)
    for n in ["1", "2", "3"]:
        h = h @ params[f"w{n}"] + params[f"b{n}"]
        h = jnp.where(h > 0, h, alpha * h)
    out = h @ params["wo"] + params["bo"]
    if sigmoid_out:
        out = jax.nn.sigmoid(out)
    return out


def _reference_forward_bf16(x, params, *, alpha=ALPHA, sigmoid_out=False):
    """Mirrors the kernel's bf16-operand / f32-accumulate arithmetic."""
    B = x.shape[0]
    h = x.reshape(B, -1).astype(jnp.float32)
    for n in ["1", "2", "3"]:
        h = jnp.dot(h.astype(jnp.bfloat16), params[f"w{n}"].astype(jnp.bfloat16),
                    preferred_element_type=jnp.float32) + params[f"b{n}"]
        h = jnp.where(h > 0, h, alpha * h)
    out = jnp.dot(h.astype(jnp.bfloat16), params["wo"].astype(jnp.bfloat16),
                  preferred_element_type=jnp.float32) + params["bo"]
    if sigmoid_out:
        out = jax.nn.sigmoid(out)
    return out


if __name__ == "__main__":
    key = jax.random.PRNGKey(0)
    k_params, k_x, k_x2 = jax.random.split(key, 3)

    # Small shapes consistent with the module: input_size=(8, 32) -> 256 flat features.
    input_size = (8, 32)
    hidden_units = 64
    params = init_params(k_params, input_size, hidden_units=hidden_units, num_hidden_layers=3)

    # 1) Tiny batch (module-default style demo).
    x = jax.random.normal(k_x, (2, input_size[0], input_size[1]), jnp.float32)
    out = jax.block_until_ready(audio_discriminator_forward(x, params, sigmoid_out=False))
    assert out.shape == (2, 1)
    assert jnp.allclose(out, _reference_forward_bf16(x, params), atol=2e-3, rtol=2e-3), \
        "mismatch vs bf16-matched reference"
    assert jnp.allclose(out, _reference_forward_f32(x, params), atol=5e-2, rtol=5e-2), \
        "mismatch vs f32 reference"

    # 2) Multi-tile batch with a ragged last block (exercises the no-pad grid path +
    #    the optional sigmoid output).
    xb = jax.random.normal(k_x2, (50, input_size[0], input_size[1]), jnp.float32)
    outb = jax.block_until_ready(
        audio_discriminator_forward(xb, params, sigmoid_out=True, block_batch=32))
    assert outb.shape == (50, 1)
    assert jnp.allclose(outb, _reference_forward_bf16(xb, params, sigmoid_out=True),
                        atol=2e-3, rtol=2e-3), "mismatch vs bf16-matched reference (ragged)"

    print("KERNEL_OK")
</pallas_src>

<mosaic_0001>
module attributes {stable_mosaic.version = 11 : i64} {
  func.func @_mlp_kernel(%arg0: i32, %arg1: memref<8x256xf32, #tpu.memory_space<vmem>>, %arg2: memref<256x64xbf16, #tpu.memory_space<vmem>>, %arg3: memref<1x64xf32, #tpu.memory_space<vmem>>, %arg4: memref<64x64xbf16, #tpu.memory_space<vmem>>, %arg5: memref<1x64xf32, #tpu.memory_space<vmem>>, %arg6: memref<64x64xbf16, #tpu.memory_space<vmem>>, %arg7: memref<1x64xf32, #tpu.memory_space<vmem>>, %arg8: memref<64x1xbf16, #tpu.memory_space<vmem>>, %arg9: memref<1x1xf32, #tpu.memory_space<vmem>>, %arg10: memref<8x1xf32, #tpu.memory_space<vmem>>) attributes {dimension_semantics = [#tpu.dimension_semantics<parallel>], iteration_bounds = array<i64: 1>, scalar_prefetch = 0 : i64, scratch_operands = 0 : i64, tpu.core_type = #tpu.core_type<tc>, window_params = [{transform_indices = @transform_0, window_bounds = array<i64: 8, 256>}, {pipeline_mode = #tpu.pipeline_mode<synchronous>, transform_indices = @transform_1, window_bounds = array<i64: 256, 64>}, {pipeline_mode = #tpu.pipeline_mode<synchronous>, transform_indices = @transform_2, window_bounds = array<i64: 1, 64>}, {pipeline_mode = #tpu.pipeline_mode<synchronous>, transform_indices = @transform_3, window_bounds = array<i64: 64, 64>}, {pipeline_mode = #tpu.pipeline_mode<synchronous>, transform_indices = @transform_4, window_bounds = array<i64: 1, 64>}, {pipeline_mode = #tpu.pipeline_mode<synchronous>, transform_indices = @transform_5, window_bounds = array<i64: 64, 64>}, {pipeline_mode = #tpu.pipeline_mode<synchronous>, transform_indices = @transform_6, window_bounds = array<i64: 1, 64>}, {pipeline_mode = #tpu.pipeline_mode<synchronous>, transform_indices = @transform_7, window_bounds = array<i64: 64, 1>}, {pipeline_mode = #tpu.pipeline_mode<synchronous>, transform_indices = @transform_8, window_bounds = array<i64: 1, 1>}, {transform_indices = @transform_9, window_bounds = array<i64: 8, 1>}]} {
    %c0 = arith.constant 0 : index
    %c0_0 = arith.constant 0 : index
    %0 = vector.load %arg1[%c0, %c0_0] : memref<8x256xf32, #tpu.memory_space<vmem>>, vector<8x256xf32>
    %1 = arith.truncf %0 : vector<8x256xf32> to vector<8x256xbf16>
    %c0_1 = arith.constant 0 : index
    %c0_2 = arith.constant 0 : index
    %2 = vector.load %arg2[%c0_1, %c0_2] : memref<256x64xbf16, #tpu.memory_space<vmem>>, vector<256x64xbf16>
    %cst = arith.constant dense<0.000000e+00> : vector<8x64xf32>
    %3 = tpu.matmul %1, %2, %cst {dimension_numbers = #tpu.dot_dimension_numbers<[1], [0], [0], [1], [0, 0, 1, 1], [], []>} : vector<8x256xbf16>, vector<256x64xbf16>, vector<8x64xf32> -> vector<8x64xf32>
    %c0_3 = arith.constant 0 : index
    %c0_4 = arith.constant 0 : index
    %4 = vector.load %arg3[%c0_3, %c0_4] : memref<1x64xf32, #tpu.memory_space<vmem>>, vector<1x64xf32>
    %5 = vector.broadcast %4 : vector<1x64xf32> to vector<8x64xf32>
    %6 = arith.addf %3, %5 : vector<8x64xf32>
    %cst_5 = arith.constant 0.000000e+00 : f32
    %7 = vector.broadcast %cst_5 : f32 to vector<8x64xf32>
    %8 = arith.cmpf ogt, %6, %7 : vector<8x64xf32>
    %cst_6 = arith.constant 0.00999999977 : f32
    %9 = vector.broadcast %cst_6 : f32 to vector<8x64xf32>
    %10 = arith.mulf %9, %6 : vector<8x64xf32>
    %11 = arith.select %8, %6, %10 : vector<8x64xi1>, vector<8x64xf32>
    %12 = arith.truncf %11 : vector<8x64xf32> to vector<8x64xbf16>
    %c0_7 = arith.constant 0 : index
    %c0_8 = arith.constant 0 : index
    %13 = vector.load %arg4[%c0_7, %c0_8] : memref<64x64xbf16, #tpu.memory_space<vmem>>, vector<64x64xbf16>
    %cst_9 = arith.constant dense<0.000000e+00> : vector<8x64xf32>
    %14 = tpu.matmul %12, %13, %cst_9 {dimension_numbers = #tpu.dot_dimension_numbers<[1], [0], [0], [1], [0, 0, 1, 1], [], []>} : vector<8x64xbf16>, vector<64x64xbf16>, vector<8x64xf32> -> vector<8x64xf32>
    %c0_10 = arith.constant 0 : index
    %c0_11 = arith.constant 0 : index
    %15 = vector.load %arg5[%c0_10, %c0_11] : memref<1x64xf32, #tpu.memory_space<vmem>>, vector<1x64xf32>
    %16 = vector.broadcast %15 : vector<1x64xf32> to vector<8x64xf32>
    %17 = arith.addf %14, %16 : vector<8x64xf32>
    %cst_12 = arith.constant 0.000000e+00 : f32
    %18 = vector.broadcast %cst_12 : f32 to vector<8x64xf32>
    %19 = arith.cmpf ogt, %17, %18 : vector<8x64xf32>
    %cst_13 = arith.constant 0.00999999977 : f32
    %20 = vector.broadcast %cst_13 : f32 to vector<8x64xf32>
    %21 = arith.mulf %20, %17 : vector<8x64xf32>
    %22 = arith.select %19, %17, %21 : vector<8x64xi1>, vector<8x64xf32>
    %23 = arith.truncf %22 : vector<8x64xf32> to vector<8x64xbf16>
    %c0_14 = arith.constant 0 : index
    %c0_15 = arith.constant 0 : index
    %24 = vector.load %arg6[%c0_14, %c0_15] : memref<64x64xbf16, #tpu.memory_space<vmem>>, vector<64x64xbf16>
    %cst_16 = arith.constant dense<0.000000e+00> : vector<8x64xf32>
    %25 = tpu.matmul %23, %24, %cst_16 {dimension_numbers = #tpu.dot_dimension_numbers<[1], [0], [0], [1], [0, 0, 1, 1], [], []>} : vector<8x64xbf16>, vector<64x64xbf16>, vector<8x64xf32> -> vector<8x64xf32>
    %c0_17 = arith.constant 0 : index
    %c0_18 = arith.constant 0 : index
    %26 = vector.load %arg7[%c0_17, %c0_18] : memref<1x64xf32, #tpu.memory_space<vmem>>, vector<1x64xf32>
    %27 = vector.broadcast %26 : vector<1x64xf32> to vector<8x64xf32>
    %28 = arith.addf %25, %27 : vector<8x64xf32>
    %cst_19 = arith.constant 0.000000e+00 : f32
    %29 = vector.broadcast %cst_19 : f32 to vector<8x64xf32>
    %30 = arith.cmpf ogt, %28, %29 : vector<8x64xf32>
    %cst_20 = arith.constant 0.00999999977 : f32
    %31 = vector.broadcast %cst_20 : f32 to vector<8x64xf32>
    %32 = arith.mulf %31, %28 : vector<8x64xf32>
    %33 = arith.select %30, %28, %32 : vector<8x64xi1>, vector<8x64xf32>
    %34 = arith.truncf %33 : vector<8x64xf32> to vector<8x64xbf16>
    %c0_21 = arith.constant 0 : index
    %c0_22 = arith.constant 0 : index
    %35 = vector.load %arg8[%c0_21, %c0_22] : memref<64x1xbf16, #tpu.memory_space<vmem>>, vector<64x1xbf16>
    %cst_23 = arith.constant dense<0.000000e+00> : vector<8x1xf32>
    %36 = tpu.matmul %34, %35, %cst_23 {dimension_numbers = #tpu.dot_dimension_numbers<[1], [0], [0], [1], [0, 0, 1, 1], [], []>} : vector<8x64xbf16>, vector<64x1xbf16>, vector<8x1xf32> -> vector<8x1xf32>
    %c0_24 = arith.constant 0 : index
    %c0_25 = arith.constant 0 : index
    %37 = vector.load %arg9[%c0_24, %c0_25] : memref<1x1xf32, #tpu.memory_space<vmem>>, vector<1x1xf32>
    %38 = vector.broadcast %37 : vector<1x1xf32> to vector<8x1xf32>
    %39 = arith.addf %36, %38 : vector<8x1xf32>
    %c0_26 = arith.constant 0 : index
    %c0_27 = arith.constant 0 : index
    %40 = vector.load %arg10[%c0_26, %c0_27] : memref<8x1xf32, #tpu.memory_space<vmem>>, vector<8x1xf32>
    tpu.vector_store %arg10[%c0_26, %c0_27], %39 {strides = array<i32>} : memref<8x1xf32, #tpu.memory_space<vmem>>, vector<8x1xf32>,
    return
  }
  func.func @transform_0(%arg0: i32) -> (i32, i32) {
    %c0_i32 = arith.constant 0 : i32
    %c0_i32_0 = arith.constant 0 : i32
    return %arg0, %c0_i32 : i32, i32
  }
  func.func @transform_1(%arg0: i32) -> (i32, i32) {
    %c0_i32 = arith.constant 0 : i32
    %c0_i32_0 = arith.constant 0 : i32
    %c0_i32_1 = arith.constant 0 : i32
    return %c0_i32, %c0_i32_0 : i32, i32
  }
  func.func @transform_2(%arg0: i32) -> (i32, i32) {
    %c0_i32 = arith.constant 0 : i32
    %c0_i32_0 = arith.constant 0 : i32
    %c0_i32_1 = arith.constant 0 : i32
    return %c0_i32, %c0_i32_0 : i32, i32
  }
  func.func @transform_3(%arg0: i32) -> (i32, i32) {
    %c0_i32 = arith.constant 0 : i32
    %c0_i32_0 = arith.constant 0 : i32
    %c0_i32_1 = arith.constant 0 : i32
    return %c0_i32, %c0_i32_0 : i32, i32
  }
  func.func @transform_4(%arg0: i32) -> (i32, i32) {
    %c0_i32 = arith.constant 0 : i32
    %c0_i32_0 = arith.constant 0 : i32
    %c0_i32_1 = arith.constant 0 : i32
    return %c0_i32, %c0_i32_0 : i32, i32
  }
  func.func @transform_5(%arg0: i32) -> (i32, i32) {
    %c0_i32 = arith.constant 0 : i32
    %c0_i32_0 = arith.constant 0 : i32
    %c0_i32_1 = arith.constant 0 : i32
    return %c0_i32, %c0_i32_0 : i32, i32
  }
  func.func @transform_6(%arg0: i32) -> (i32, i32) {
    %c0_i32 = arith.constant 0 : i32
    %c0_i32_0 = arith.constant 0 : i32
    %c0_i32_1 = arith.constant 0 : i32
    return %c0_i32, %c0_i32_0 : i32, i32
  }
  func.func @transform_7(%arg0: i32) -> (i32, i32) {
    %c0_i32 = arith.constant 0 : i32
    %c0_i32_0 = arith.constant 0 : i32
    %c0_i32_1 = arith.constant 0 : i32
    return %c0_i32, %c0_i32_0 : i32, i32
  }
  func.func @transform_8(%arg0: i32) -> (i32, i32) {
    %c0_i32 = arith.constant 0 : i32
    %c0_i32_0 = arith.constant 0 : i32
    %c0_i32_1 = arith.constant 0 : i32
    return %c0_i32, %c0_i32_0 : i32, i32
  }
  func.func @transform_9(%arg0: i32) -> (i32, i32) {
    %c0_i32 = arith.constant 0 : i32
    %c0_i32_0 = arith.constant 0 : i32
    return %arg0, %c0_i32 : i32, i32
  }
}

</mosaic_0001>

<bundles_post_ra>
// kernel: tpu_custom_call.1
= control target key start
LH: loop header
LB: loop body
LE: loop exit
PB: predicated region body
PF: predicated region fallthrough
CT: control target
= control target key end

     0   :  { %vm237_vm1 = vcmask 523264   ;;  %vm366_vm4 = vcmask 7168   ;;  %s677_s1 = inlined_call_operand.vmem [shape: bf16[256,64], index: 1, kind: input, shape index: {}]   ;;  %s678_s3 = inlined_call_operand.vmem [shape: bf16[64,64], index: 3, kind: input, shape index: {}]   ;;  %s679_s2 = inlined_call_operand.vmem [shape: f32[1,64], index: 2, kind: input, shape index: {}]   ;;  %s680_s0 = inlined_call_operand.vmem [shape: f32[8,256], index: 0, kind: input, shape index: {}]   ;;  %s681_s4 = inlined_call_operand.vmem [shape: f32[1,64], index: 4, kind: input, shape index: {}]   ;;  %s682_s5 = inlined_call_operand.vmem [shape: bf16[64,64], index: 5, kind: input, shape index: {}]   ;;  %s683_s6 = inlined_call_operand.vmem [shape: f32[1,64], index: 6, kind: input, shape index: {}]   ;;  %s684_s7 = inlined_call_operand.vmem [shape: bf16[64,1], index: 7, kind: input, shape index: {}]   ;;  %s685_s8 = inlined_call_operand.<no memory space> [shape: f32[1,1], index: 8, kind: input, shape index: {}]   ;;  %s686_s9 = inlined_call_operand.vmem [shape: f32[8,1], index: 9, kind: output, shape index: {}]  }
   0x1   :  { %v494_v0 = vld [vmem:[%s677_s1 + $0x38] sm:$0xff]  ;;  %v493_v2 = vld [vmem:[%s677_s1 + $0x30] sm:$0xff]  ;;  %v492_v4 = vld [vmem:[%s677_s1 + $0x28] sm:$0xff]  ;;  %v14_v49 = vstv %s685_s8 }
   0x2   :  { %v502_v1 = vld [vmem:[%s677_s1 + $0x78] sm:$0xff]  ;;  %171 = vmatpush.bf16.msra.mxu0 %v494_v0  ;;  %v501_v3 = vld [vmem:[%s677_s1 + $0x70] sm:$0xff]  ;;  %v500_v5 = vld [vmem:[%s677_s1 + $0x68] sm:$0xff]  ;;  %15 = vst [vmem:[#allocation2] sm:$0x1] %v14_v49 }
   0x3   :  { %184 = vmatpush.bf16.msra.mxu1 %v502_v1  ;;  %v506_v6 = vld [vmem:[%s678_s3 + $0x18] sm:$0xff]  ;;  %v505_v7 = vld [vmem:[%s678_s3 + $0x10] sm:$0xff]  ;;  %v491_v8 = vld [vmem:[%s677_s1 + $0x20] sm:$0xff] }
   0x4   :  { %245 = vmatpush.bf16.msra.mxu2 %v506_v6  ;;  %v499_v9 = vld [vmem:[%s677_s1 + $0x60] sm:$0xff]  ;;  %v490_v10 = vld [vmem:[%s677_s1 + $0x18] sm:$0xff]  ;;  %v489_v12 = vld [vmem:[%s677_s1 + $0x10] sm:$0xff] }
   0x5   :  { %v498_v11 = vld [vmem:[%s677_s1 + $0x58] sm:$0xff]  ;;  %v497_v13 = vld [vmem:[%s677_s1 + $0x50] sm:$0xff]  ;;  %v488_v14 = vld [vmem:[%s677_s1 + $0x8] sm:$0xff] }
   0x6   :  { %172 = vmatpush.bf16.msra.mxu0 %v493_v2  ;;  %v496_v15 = vld [vmem:[%s677_s1 + $0x48] sm:$0xff]  ;;  %v487_v16 = vld [vmem:[%s677_s1] sm:$0xff]  ;;  %v510_v24 = vld [vmem:[%s682_s5 + $0x18] sm:$0xff] }
   0x7   :  { %185 = vmatpush.bf16.msra.mxu1 %v501_v3  ;;  %v495_v17 = vld [vmem:[%s677_s1 + $0x40] sm:$0xff]  ;;  %v36_v19 = vld [vmem:[%s680_s0 + $0x8] sm:$0xff]  ;;  %301 = vmatpush.bf16.msra.mxu3 %v510_v24  ;;  %v509_v25 = vld [vmem:[%s682_s5 + $0x10] sm:$0xff] }
   0x8   :  { %246 = vmatpush.bf16.msra.mxu2 %v505_v7  ;;  %v35_v18 = vld [vmem:[%s680_s0] sm:$0xff]  ;;  %v38_v21 = vpack.c.bf16 %v36_v19, %v36_v19  ;;  %v504_v22 = vld [vmem:[%s678_s3 + $0x8] sm:$0xff]  ;;  %v514_v38 = vld [vmem:[%s684_s7 + $0x18] sm:$0xff] }
   0x9   :  { %v37_v20 = vpack.c.bf16 %v35_v18, %v35_v18  ;;  %v503_v23 = vld [vmem:[%s678_s3] sm:$0xff]  ;;  %v508_v36 = vld [vmem:[%s682_s5 + $0x8] sm:$0xff]  ;;  %v513_v39 = vld [vmem:[%s684_s7 + $0x10] sm:$0xff] }
   0xa   :  { %173 = vmatpush.bf16.msra.mxu0 %v492_v4  ;;  %v515_v26 = vld [vmem:[%s679_s2] ss:$0 sm:$0xff]  ;;  %v512_v47 = vld [vmem:[%s684_s7 + $0x8] sm:$0xff] }
   0xb   :  { %186 = vmatpush.bf16.msra.mxu1 %v500_v5  ;;  %302 = vmatpush.bf16.msra.mxu3 %v509_v25  ;;  %v507_v37 = vld [vmem:[%s682_s5] sm:$0xff] }
   0xc   :  { %247 = vmatpush.bf16.msra.mxu2 %v504_v22  ;;  %v516_v40 = vld [vmem:[%s681_s4] ss:$0 sm:$0xff] }
   0xd   :  { %v511_v48 = vld [vmem:[%s684_s7] sm:$0xff] }
   0xe   :  { %174 = vmatpush.bf16.msra.mxu0 %v491_v8  ;;  %v517_v50 = vld [vmem:[%s683_s6] ss:$0 sm:$0xff] }
   0xf   :  { %187 = vmatpush.bf16.msra.mxu1 %v499_v9  ;;  %303 = vmatpush.bf16.msra.mxu3 %v508_v36  ;;  %v518_v57 = vld [vmem:[#allocation2] ss:$0 sm:$0xff] }
  0x10   :  { %248 = vmatpush.bf16.msra.mxu2 %v503_v23 }
  0x12   :  { %175 = vmatpush.bf16.msra.mxu0 %v490_v10 }
  0x13   :  { %188 = vmatpush.bf16.msra.mxu1 %v498_v11  ;;  %304 = vmatpush.bf16.msra.mxu3 %v507_v37 }
  0x14   :  { %357 = vmatpush.bf16.msrb.mxu2 %v514_v38 }
  0x16   :  { %176 = vmatpush.bf16.msra.mxu0 %v489_v12 }
  0x17   :  { %189 = vmatpush.bf16.msra.mxu1 %v497_v13 }
  0x18   :  { %358 = vmatpush.bf16.msrb.mxu2 %v513_v39 }
  0x1a   :  { %177 = vmatpush.bf16.msra.mxu0 %v488_v14 }
  0x1b   :  { %190 = vmatpush.bf16.msra.mxu1 %v496_v15 }
  0x1c   :  { %359 = vmatpush.bf16.msrb.mxu2 %v512_v47 }
  0x1e   :  { %178 = vmatpush.bf16.msra.mxu0 %v487_v16 }
  0x1f   :  { %191 = vmatpush.bf16.msra.mxu1 %v495_v17 }
  0x20   :  { %360 = vmatpush.bf16.msrb.mxu2 %v511_v48 }
  0x21   :  { %179 = vmatmul.bf16.vlgmr.msra.gmra.mxu0 %v37_v20 }
  0x22   :  { %192 = vmatmul.bf16.vlgmr.msra.gmra.mxu1 %v38_v21 }
  0x9e   :  { %v180_v27 = vpop.f32.mrf.mxu0 }
  0x9f   :  { %v193_v28 = vpop.f32.mrf.mxu1  ;;  %v181_v29 = vadd.f32 %v515_v26, %v180_v27 }
  0xa1   :  { %v194_v30 = vadd.f32 %v193_v28, %v181_v29 }
  0xa3   :  { %vm197_vm0 = vcmp.gt.f32.partialorder %v194_v30, 0.0  ;;  %v198_v31 = vmul.f32 0.01, %v194_v30 }
  0xa5   :  { %v199_v32 = vsel %vm197_vm0, %v194_v30, %v198_v31 }
  0xa6   :  { %v182_v33 = vpop.f32.mrf.mxu0  ;;  %v200_v35 = vpack.c.bf16 %v199_v32, %v199_v32 }
  0xa7   :  { %v195_v34 = vpop.f32.mrf.mxu1 }
  0xa8   :  { %452 = vmatmul.msk.bf16.vlgmr.msra.gmra.mxu2 %vm237_vm1, %v200_v35 }
 0x12b   :  { %v250_v41 = vpop.f32.mrf.mxu2 }
 0x12c   :  { %v251_v42 = vadd.f32 %v516_v40, %v250_v41 }
 0x12e   :  { %vm254_vm2 = vcmp.gt.f32.partialorder %v251_v42, 0.0  ;;  %v255_v43 = vmul.f32 0.01, %v251_v42 }
 0x130   :  { %v256_v44 = vsel %vm254_vm2, %v251_v42, %v255_v43 }
 0x131   :  { %v257_v45 = vpack.c.bf16 %v256_v44, %v256_v44 }
 0x133   :  { %v252_v46 = vpop.f32.mrf.mxu2  ;;  %469 = vmatmul.msk.bf16.vlgmr.msra.gmra.mxu3 %vm237_vm1, %v257_v45 }
 0x1b6   :  { %v306_v51 = vpop.f32.mrf.mxu3 }
 0x1b7   :  { %v307_v52 = vadd.f32 %v517_v50, %v306_v51 }
 0x1b9   :  { %vm310_vm3 = vcmp.gt.f32.partialorder %v307_v52, 0.0  ;;  %v311_v53 = vmul.f32 0.01, %v307_v52 }
 0x1bb   :  { %v312_v54 = vsel %vm310_vm3, %v307_v52, %v311_v53 }
 0x1bc   :  { %v313_v55 = vpack.c.bf16 %v312_v54, %v312_v54 }
 0x1be   :  { %v308_v56 = vpop.f32.mrf.mxu3  ;;  %486 = vmatmul.msk.bf16.vlgmr.msrb.gmra.mxu2 %vm237_vm1, %v313_v55 }
 0x241   :  { %v362_v58 = vpop.f32.mrf.mxu2 }
 0x242   :  { %v363_v59 = vadd.f32 %v518_v57, %v362_v58 }
 0x244   :  { %367 = vst.msk [vmem:[%s686_s9] sm:$0xff] %vm366_vm4, %v363_v59 }
 0x249   :  { %v364_v60 = vpop.f32.mrf.mxu2 }

</bundles_post_ra>
